<compile_context>
chip_gen: v6e
topology: v6e:2x2x1
jax: 0.10.0
libtpu: 0.0.40
codegen_flags: <defaults>
</compile_context>

<pallas_src>
import functools

import jax
import jax.numpy as jnp
from jax import lax
from jax.experimental import pallas as pl
from jax.experimental.pallas import tpu as pltpu


def _focal_kernel(x_ref, t_ref, out_ref, acc_ref, *,
                  gamma, size_average, p_valid, m_valid, tp):
    n_i = pl.program_id(0)
    p_i = pl.program_id(1)
    c = x_ref.shape[0]

    @pl.when(jnp.logical_and(n_i == 0, p_i == 0))
    def _():
        acc_ref[...] = jnp.zeros_like(acc_ref)

    # (C, TP) tile: classes on sublanes, pixels on lanes.  Cast per-tile so the
    # HBM stream stays in the input dtype (bf16 inputs stream half the bytes).
    x = x_ref[...].astype(jnp.float32)            # (C, TP)
    t = t_ref[...]                                # (1, TP) int32

    # numerically-stable log-softmax over the class (sublane) axis
    mx = jnp.max(x, axis=0, keepdims=True)        # (1, TP)
    z = x - mx
    lse = jnp.log(jnp.sum(jnp.exp(z), axis=0, keepdims=True))   # (1, TP)

    # gather z at the target class via a one-hot select over sublanes
    cls = lax.broadcasted_iota(jnp.int32, (c, tp), 0)
    onehot = (cls == t).astype(jnp.float32)       # (C, TP)
    logpt = jnp.sum(z * onehot, axis=0, keepdims=True) - lse    # (1, TP)
    pt = jnp.exp(logpt)

    if gamma == 0:
        loss = -logpt
    elif float(gamma).is_integer() and gamma > 0:
        # integer gamma: repeated VPU multiplies instead of pow (= log+exp on EUP)
        w = 1.0 - pt
        for _ in range(int(gamma) - 1):
            w = w * (1.0 - pt)
        loss = -w * logpt
    else:
        loss = -((1.0 - pt) ** gamma) * logpt

    # mask lanes past the true pixel count (partial last block; garbage in the
    # padded region is dropped by the select, so inf/NaN there cannot leak)
    pix = p_i * tp + lax.broadcasted_iota(jnp.int32, (1, tp), 1)
    loss = jnp.where(pix < p_valid, loss, 0.0)

    # vector partial sums every step; only the final step does the cross-lane
    # reduction to a scalar
    acc_ref[...] += loss

    @pl.when(jnp.logical_and(n_i == pl.num_programs(0) - 1,
                             p_i == pl.num_programs(1) - 1))
    def _():
        total = jnp.sum(acc_ref[...])
        if size_average:
            total = total / jnp.float32(m_valid)
        out_ref[...] = jnp.reshape(total, (1, 1))


def _choose_tp(p, c):
    """Pixels per block: multiple of 128, f32 working tile kept around ~1 MiB.

    Conservative enough to stay far below v7x's 32 MiB default-scoped VMEM
    even with double-buffered inputs, while being large enough (up to 16K
    lane-dense pixels) to amortize the ~0.35 us per-grid-step overhead.
    """
    p_ceil = ((p + 127) // 128) * 128
    budget = (1 << 20) // max(1, c * 4)
    return max(128, min(p_ceil, 16384, (budget // 128) * 128))


def focal_loss(x, target, *, gamma=0.0, size_average=True, tp=None):
    """JAX/Pallas equivalent of FocalLoss(gamma, size_average)(input, target)."""
    x = jnp.asarray(x)
    target = jnp.asarray(target)

    if x.ndim > 2:
        # NCHW (or NC...) -> (N, C, P): pure reshape, no HBM copy.  The PyTorch
        # transpose(1,2)+contiguous().view(-1,C) is folded into the kernel's
        # tiling (pixels on lanes) instead of materializing a transposed copy.
        n, c = x.shape[0], x.shape[1]
        x3 = x.reshape(n, c, -1)
        t3 = target.reshape(n, 1, -1).astype(jnp.int32)
    else:
        # plain classification path: put samples on the lane axis
        m, c = x.shape
        x3 = jnp.swapaxes(x, 0, 1)[None]          # (1, C, M)
        t3 = target.reshape(1, 1, m).astype(jnp.int32)

    n, c, p = x3.shape
    if tp is None:
        tp = _choose_tp(p, c)
    n_pb = pl.cdiv(p, tp)

    # No padding and no dtype cast in the wrapper: the partial last pixel block
    # is handled by the in-kernel mask, and the f32 cast happens per-tile.
    kernel = functools.partial(
        _focal_kernel, gamma=gamma, size_average=size_average,
        p_valid=p, m_valid=n * p, tp=tp)

    out = pl.pallas_call(
        kernel,
        out_shape=jax.ShapeDtypeStruct((1, 1), jnp.float32),
        grid_spec=pltpu.PrefetchScalarGridSpec(
            num_scalar_prefetch=0,
            grid=(n, n_pb),
            in_specs=[
                pl.BlockSpec((None, c, tp), lambda i, j: (i, 0, j)),
                pl.BlockSpec((None, 1, tp), lambda i, j: (i, 0, j)),
            ],
            out_specs=pl.BlockSpec((1, 1), lambda i, j: (0, 0)),
            scratch_shapes=[pltpu.VMEM((1, tp), jnp.float32)],
        ),
        compiler_params=pltpu.CompilerParams(
            # both axes revisit the same output block (running sum) -> arbitrary
            dimension_semantics=("arbitrary", "arbitrary"),
        ),
    )(x3, t3)
    # TODO(synk): optional v7x win — add a leading parallel grid axis of size
    # num_cores with per-core partial outputs summed in the wrapper.
    return out[0, 0]


def _focal_loss_ref(x, target, gamma=0.0, size_average=True):
    # pure-JAX reference for sanity checking
    if x.ndim > 2:
        n, c = x.shape[0], x.shape[1]
        x = jnp.transpose(x.reshape(n, c, -1), (0, 2, 1)).reshape(-1, c)
    target = target.reshape(-1)
    logp = jax.nn.log_softmax(x.astype(jnp.float32), axis=-1)
    logpt = jnp.take_along_axis(logp, target[:, None].astype(jnp.int32), axis=1)[:, 0]
    pt = jnp.exp(logpt)
    loss = -((1.0 - pt) ** gamma) * logpt
    return loss.mean() if size_average else loss.sum()


if __name__ == "__main__":
    key = jax.random.PRNGKey(0)
    k1, k2, k3, k4 = jax.random.split(key, 4)

    # segmentation-style NCHW logits
    N, C, H, W = 2, 4, 16, 16
    x = jax.random.normal(k1, (N, C, H, W), dtype=jnp.float32)
    target = jax.random.randint(k2, (N, H, W), 0, C, dtype=jnp.int32)

    out = jax.block_until_ready(focal_loss(x, target, gamma=2.0, size_average=True))
    ref = _focal_loss_ref(x, target, gamma=2.0, size_average=True)
    assert jnp.allclose(out, ref, rtol=1e-5, atol=1e-6), (out, ref)

    # default config (gamma=0, size_average=True)
    out0 = jax.block_until_ready(focal_loss(x, target, gamma=0.0, size_average=True))
    ref0 = _focal_loss_ref(x, target, gamma=0.0, size_average=True)
    assert jnp.allclose(out0, ref0, rtol=1e-5, atol=1e-6), (out0, ref0)

    # sum reduction + spatial size that is NOT a multiple of 128
    # (exercises the partial-block pixel mask, no wrapper-side padding)
    N2, C2, H2, W2 = 1, 5, 12, 12
    x2 = jax.random.normal(k3, (N2, C2, H2, W2), dtype=jnp.float32)
    t2 = jax.random.randint(k4, (N2, H2, W2), 0, C2, dtype=jnp.int32)
    out2 = jax.block_until_ready(focal_loss(x2, t2, gamma=2.0, size_average=False))
    ref2 = _focal_loss_ref(x2, t2, gamma=2.0, size_average=False)
    assert jnp.allclose(out2, ref2, rtol=1e-5, atol=1e-5), (out2, ref2)

    # bf16 logits streamed straight from HBM (f32 cast only inside the kernel)
    xb = x.astype(jnp.bfloat16)
    outb = jax.block_until_ready(focal_loss(xb, target, gamma=2.0, size_average=True))
    refb = _focal_loss_ref(xb, target, gamma=2.0, size_average=True)
    assert jnp.allclose(outb, refb, rtol=1e-3, atol=1e-4), (outb, refb)

    print("KERNEL_OK")
</pallas_src>

<mosaic_0001>
module attributes {stable_mosaic.version = 11 : i64} {
  func.func @_focal_kernel(%arg0: i32, %arg1: i32, %arg2: memref<1x4x256xf32, #tpu.memory_space<vmem>>, %arg3: memref<1x1x256xi32, #tpu.memory_space<vmem>>, %arg4: memref<1x1xf32, #tpu.memory_space<vmem>>, %arg5: memref<1x256xf32, #tpu.memory_space<vmem>>) attributes {dimension_semantics = [#tpu.dimension_semantics<arbitrary>, #tpu.dimension_semantics<arbitrary>], iteration_bounds = array<i64: 2, 1>, scalar_prefetch = 0 : i64, scratch_operands = 1 : i64, tpu.core_type = #tpu.core_type<tc>, window_params = [{transform_indices = @transform_0, window_bounds = array<i64: 1, 4, 256>}, {transform_indices = @transform_1, window_bounds = array<i64: 1, 1, 256>}, {pipeline_mode = #tpu.pipeline_mode<synchronous>, transform_indices = @transform_2, window_bounds = array<i64: 1, 1>}]} {
    %c0_i32 = arith.constant 0 : i32
    %0 = arith.cmpi eq, %arg0, %c0_i32 : i32
    %c0_i32_0 = arith.constant 0 : i32
    %1 = arith.cmpi eq, %arg1, %c0_i32_0 : i32
    %2 = arith.andi %0, %1 : i1
    %3 = arith.extui %2 : i1 to i32
    %c0_i32_1 = arith.constant 0 : i32
    %4 = arith.cmpi ne, %3, %c0_i32_1 : i32
    scf.if %4 {
      %cst_20 = arith.constant 0.000000e+00 : f32
      %51 = vector.broadcast %cst_20 : f32 to vector<1x256xf32>
      %c0_21 = arith.constant 0 : index
      %c0_22 = arith.constant 0 : index
      %52 = vector.load %arg5[%c0_21, %c0_22] : memref<1x256xf32, #tpu.memory_space<vmem>>, vector<1x256xf32>
      tpu.vector_store %arg5[%c0_21, %c0_22], %51 {strides = array<i32>} : memref<1x256xf32, #tpu.memory_space<vmem>>, vector<1x256xf32>,
    } else {
    }
    %c0 = arith.constant 0 : index
    %c0_2 = arith.constant 0 : index
    %c0_3 = arith.constant 0 : index
    %5 = vector.load %arg2[%c0, %c0_2, %c0_3] : memref<1x4x256xf32, #tpu.memory_space<vmem>>, vector<1x4x256xf32>
    %6 = vector.shape_cast %5 : vector<1x4x256xf32> to vector<4x256xf32>
    %c0_4 = arith.constant 0 : index
    %c0_5 = arith.constant 0 : index
    %c0_6 = arith.constant 0 : index
    %7 = vector.load %arg3[%c0_4, %c0_5, %c0_6] : memref<1x1x256xi32, #tpu.memory_space<vmem>>, vector<1x1x256xi32>
    %8 = vector.shape_cast %7 : vector<1x1x256xi32> to vector<1x256xi32>
    %cst = arith.constant dense<0xFF800000> : vector<256xf32>
    %9 = vector.multi_reduction <maximumf>, %6, %cst [0] : vector<4x256xf32> to vector<256xf32>
    %10 = vector.shape_cast %9 : vector<256xf32> to vector<1x256xf32>
    %11 = vector.broadcast %10 : vector<1x256xf32> to vector<4x256xf32>
    %12 = arith.subf %6, %11 : vector<4x256xf32>
    %13 = math.exp %12 : vector<4x256xf32>
    %cst_7 = arith.constant dense<0.000000e+00> : vector<256xf32>
    %14 = vector.multi_reduction <add>, %13, %cst_7 [0] : vector<4x256xf32> to vector<256xf32>
    %15 = vector.shape_cast %14 : vector<256xf32> to vector<1x256xf32>
    %16 = math.log %15 : vector<1x256xf32>
    %17 = tpu.iota {dimensions = array<i32: 0>} : vector<4x256xi32>
    %18 = vector.broadcast %8 : vector<1x256xi32> to vector<4x256xi32>
    %19 = arith.cmpi eq, %17, %18 : vector<4x256xi32>
    %20 = arith.extui %19 : vector<4x256xi1> to vector<4x256xi32>
    %21 = arith.sitofp %20 : vector<4x256xi32> to vector<4x256xf32>
    %22 = arith.mulf %12, %21 : vector<4x256xf32>
    %cst_8 = arith.constant dense<0.000000e+00> : vector<256xf32>
    %23 = vector.multi_reduction <add>, %22, %cst_8 [0] : vector<4x256xf32> to vector<256xf32>
    %24 = vector.shape_cast %23 : vector<256xf32> to vector<1x256xf32>
    %25 = arith.subf %24, %16 : vector<1x256xf32>
    %26 = math.exp %25 : vector<1x256xf32>
    %cst_9 = arith.constant 1.000000e+00 : f32
    %27 = vector.broadcast %cst_9 : f32 to vector<1x256xf32>
    %28 = arith.subf %27, %26 : vector<1x256xf32>
    %cst_10 = arith.constant 1.000000e+00 : f32
    %29 = vector.broadcast %cst_10 : f32 to vector<1x256xf32>
    %30 = arith.subf %29, %26 : vector<1x256xf32>
    %31 = arith.mulf %28, %30 : vector<1x256xf32>
    %cst_11 = arith.constant 0.000000e+00 : f32
    %32 = vector.broadcast %cst_11 : f32 to vector<1x256xf32>
    %33 = arith.subf %32, %31 : vector<1x256xf32>
    %34 = arith.mulf %33, %25 : vector<1x256xf32>
    %c256_i32 = arith.constant 256 : i32
    %35 = arith.muli %arg1, %c256_i32 : i32
    %36 = tpu.iota {dimensions = array<i32: 1>} : vector<1x256xi32>
    %37 = vector.broadcast %35 : i32 to vector<1x256xi32>
    %38 = arith.addi %37, %36 : vector<1x256xi32>
    %c256_i32_12 = arith.constant 256 : i32
    %39 = vector.broadcast %c256_i32_12 : i32 to vector<1x256xi32>
    %40 = arith.cmpi slt, %38, %39 : vector<1x256xi32>
    %cst_13 = arith.constant 0.000000e+00 : f32
    %41 = vector.broadcast %cst_13 : f32 to vector<1x256xf32>
    %42 = arith.select %40, %34, %41 : vector<1x256xi1>, vector<1x256xf32>
    %c0_14 = arith.constant 0 : index
    %c0_15 = arith.constant 0 : index
    %43 = vector.load %arg5[%c0_14, %c0_15] : memref<1x256xf32, #tpu.memory_space<vmem>>, vector<1x256xf32>
    %44 = arith.addf %43, %42 : vector<1x256xf32>
    %c0_16 = arith.constant 0 : index
    %c0_17 = arith.constant 0 : index
    %45 = vector.load %arg5[%c0_16, %c0_17] : memref<1x256xf32, #tpu.memory_space<vmem>>, vector<1x256xf32>
    tpu.vector_store %arg5[%c0_16, %c0_17], %44 {strides = array<i32>} : memref<1x256xf32, #tpu.memory_space<vmem>>, vector<1x256xf32>,
    %c1_i32 = arith.constant 1 : i32
    %46 = arith.cmpi eq, %arg0, %c1_i32 : i32
    %c0_i32_18 = arith.constant 0 : i32
    %47 = arith.cmpi eq, %arg1, %c0_i32_18 : i32
    %48 = arith.andi %46, %47 : i1
    %49 = arith.extui %48 : i1 to i32
    %c0_i32_19 = arith.constant 0 : i32
    %50 = arith.cmpi ne, %49, %c0_i32_19 : i32
    scf.if %50 {
      %c0_20 = arith.constant 0 : index
      %c0_21 = arith.constant 0 : index
      %51 = vector.load %arg5[%c0_20, %c0_21] : memref<1x256xf32, #tpu.memory_space<vmem>>, vector<1x256xf32>
      %52 = vector.shape_cast %51 : vector<1x256xf32> to vector<1x1x256xf32>
      %cst_22 = arith.constant dense<0.000000e+00> : vector<1xf32>
      %53 = vector.multi_reduction <add>, %52, %cst_22 [1, 2] : vector<1x1x256xf32> to vector<1xf32>
      %54 = vector.shape_cast %53 : vector<1xf32> to vector<1x1x1xf32>
      %55 = vector.extract %54[0, 0, 0] : f32 from vector<1x1x1xf32>
      %cst_23 = arith.constant 5.120000e+02 : f32
      %56 = arith.divf %55, %cst_23 : f32
      %57 = vector.broadcast %56 : f32 to vector<1x1xf32>
      %c0_24 = arith.constant 0 : index
      %c0_25 = arith.constant 0 : index
      %58 = vector.load %arg4[%c0_24, %c0_25] : memref<1x1xf32, #tpu.memory_space<vmem>>, vector<1x1xf32>
      tpu.vector_store %arg4[%c0_24, %c0_25], %57 {strides = array<i32>} : memref<1x1xf32, #tpu.memory_space<vmem>>, vector<1x1xf32>,
    } else {
    }
    return
  }
  func.func @transform_0(%arg0: i32, %arg1: i32) -> (i32, i32, i32) {
    %c0_i32 = arith.constant 0 : i32
    %c0_i32_0 = arith.constant 0 : i32
    return %arg0, %c0_i32, %arg1 : i32, i32, i32
  }
  func.func @transform_1(%arg0: i32, %arg1: i32) -> (i32, i32, i32) {
    %c0_i32 = arith.constant 0 : i32
    %c0_i32_0 = arith.constant 0 : i32
    return %arg0, %c0_i32, %arg1 : i32, i32, i32
  }
  func.func @transform_2(%arg0: i32, %arg1: i32) -> (i32, i32) {
    %c0_i32 = arith.constant 0 : i32
    %c0_i32_0 = arith.constant 0 : i32
    %c0_i32_1 = arith.constant 0 : i32
    return %c0_i32, %c0_i32_0 : i32, i32
  }
}

</mosaic_0001>

<bundles_post_ra>
// kernel: tpu_custom_call.1
= control target key start
LH: loop header
LB: loop body
LE: loop exit
PB: predicated region body
PF: predicated region fallthrough
CT: control target
= control target key end

     0   :  { %7 = vsyncpa [#allocation4], 0  ;;  %s926_s0 = inlined_call_operand.hbm [shape: f32[2,4,256], index: 0, kind: input, shape index: {}]   ;;  %s927_s1 = inlined_call_operand.hbm [shape: s32[2,1,256], index: 1, kind: input, shape index: {}]   ;;  %s928_s2 = inlined_call_operand.hbm [shape: f32[1,1], index: 2, kind: output, shape index: {}]  }
   0x1   :  { %9 = vsyncpa [#allocation4 + $0x1], 0 }
   0x2   :  { %10 = vsyncpa [#allocation7], 0 }
   0x3   :  { %12 = vsyncpa [#allocation7 + $0x1], 0 }
   0x4   :  { %13 = vsyncpa [#allocation5], 0  ;;  %s754_s9 = smov 0   ;;  %s756_s10 = smov 0  }
   0x5   :  { %s758_s11 = smov 0   ;;  %s760_s12 = smov 0  }
   0x6   :  { %s762_s13 = smov 0   ;;  %s764_s14 = smov 0  }
   0x7 LB: > { %s486_s15 = sadd.s32 4294967295, %s731_s14   ;;  %s31_s16 = sadd.s32 1, %s727_s13  ;;  %s731_s14 = sphi %s764_s14, %s19_s14   ;;  %s727_s13 = sphi %s762_s13, %s938_s13   ;;  %s723_s12 = sphi %s760_s12, %s937_s12   ;;  %s719_s11 = sphi %s758_s11, %s936_s11   ;;  %s715_s10 = sphi %s756_s10, %s935_s10   ;;  %s711_s9 = sphi %s754_s9, %s934_s9  }
   0x8   : > { %p33_p0 = scmp.ge.s32.totalorder %s31_s16, 2  ;;  %s40_s17 = sadd.s32 1, %s719_s11 }
   0x9   : > { %p47_p1 = scmp.ne.s32.totalorder %s719_s11, %s715_s10  ;;  %p48_p2 = scmp.eq.s32.totalorder %s731_s14, 0 }
   0xa   : > { %s940_s16 = smov (%p33_p0, %s31_s16), 0  ;;  %p53_p4 = scmp.ne.s32.totalorder %s715_s10, %s711_s9 }
   0xb   : > { %p790_p3 = por %p48_p2, %p47_p1  ;;  %s35_s19 = ssub.s32 %s727_s13, %s940_s16 }
   0xc   : > { %p54_p5 = scmp.eq.s32.totalorder %s486_s15, 0  ;;  %p38_p6 = scmp.eq.s32.totalorder %s35_s19, 0 }
   0xd   : > { %p527_p8 = scmp.lt.s32.totalorder %s731_s14, 2  ;;  %s808_s22 = sand.u32 1, %s719_s11  }
   0xe   : > { %p799_p7 = por %p54_p5, %p53_p4  ;;  %s506_s23 = sshll.u32 %s727_s13, 7 }
   0xf   : > { %s805_s21 = scalar_select %p38_p6, %s719_s11, %s40_s17  }
  0x10   : > { %s489_s24 = sshll.u32 %s808_s22, 3  ;;  %s138_s27 = scalar_lea.hbm %s926_s0, %s506_s23 }
  0x11   : > { %s130_s28 = scalar_lea.vmem [#allocation3], %s489_s24  ;;  %p817_p9 = pnand %p527_p8, %p790_p3 }
  0x12   : > { %s140_s29 = sshll.u32 %s130_s28, 4  ;;  %p495_p10 = scmp.ge.s32.totalorder %s731_s14, 1  ;;  %s141_s29 = int_to_ptr.vmem [resolvable:$true] %s140_s29 }
  0x13   : > { %p166_p11 = scmp.lt.s32.totalorder %s731_s14, 3  ;;  %s127_s3 = scalar_lea.sflag [#allocation4], %s808_s22 }
  0x14   : > { %p595_p12 = pneg %p817_p9  ;;  %s606_s4 = scalar_lea.vmem %s141_s29, 128 }
  0x15   : > { %p607_p13 = scmp.ne.s32.totalorder %s141_s29, %s606_s4  ;;  %s733_s5 = smov [#allocation3]  }
  0x16   : > { %s611_s6 = sshll.u32 %s733_s5, 4  ;;  %s612_s6 = int_to_ptr.vmem [resolvable:$false] %s611_s6 }
  0x17   : > { %p609_p0 = pnand %p607_p13, %p595_p12  ;;  %s613_s7 = scalar_lea.vmem %s612_s6, 256 }
  0x18   : > { %p614_p2 = scmp.lt.s32.totalorder %s141_s29, %s612_s6  ;;  %p615_p3 = scmp.lt.s32.totalorder %s613_s7, %s606_s4 }
  0x19   : > { %p610_p1 = pneg %p609_p0 }
  0x1a   : > { %p616_p4 = por %p615_p3, %p614_p2 }
  0x1c   : > { %p617_p5 = pnand %p616_p4, %p610_p1 }
  0x1e   : > { %620 = shalt.err (!%p617_p5)
}
  0x1f   : > { %523 = dma.hbm_to_vmem [thread:$0]  (!%p817_p9), %s138_s27, 128, %s141_s29, %s127_s3  }
  0x20   : > { %p835_p6 = pnand %p495_p10, %p166_p11  ;;  %s492_s9 = sshll.u32 %s808_s22, 1 }
  0x21   : > { %s507_s17 = sshll.u32 %s727_s13, 5  ;;  %s151_s24 = scalar_lea.vmem [#allocation6], %s492_s9 }
  0x22   : > { %s159_s23 = scalar_lea.hbm %s927_s1, %s507_s17  ;;  %s161_s25 = sshll.u32 %s151_s24, 4  ;;  %s162_s25 = int_to_ptr.vmem [resolvable:$true] %s161_s25 }
  0x23   : > { %s148_s26 = scalar_lea.sflag [#allocation7], %s808_s22  ;;  %s634_s28 = scalar_lea.vmem %s162_s25, 32 }
  0x24   : > { %p635_p8 = scmp.ne.s32.totalorder %s162_s25, %s634_s28  ;;  %s734_s27 = smov [#allocation6]  }
  0x25   : > { %s639_s29 = sshll.u32 %s734_s27, 4  ;;  %s640_s29 = int_to_ptr.vmem [resolvable:$false] %s639_s29 }
  0x26   : > { %p637_p13 = pnand %p635_p8, %p595_p12  ;;  %s641_s3 = scalar_lea.vmem %s640_s29, 64 }
  0x27   : > { %p642_p10 = scmp.lt.s32.totalorder %s162_s25, %s640_s29  ;;  %p643_p11 = scmp.lt.s32.totalorder %s641_s3, %s634_s28 }
  0x28   : > { %p638_p0 = pneg %p637_p13 }
  0x29   : > { %p644_p1 = por %p643_p11, %p642_p10 }
  0x2b   : > { %p645_p2 = pnand %p644_p1, %p638_p0 }
  0x2d   : > { %648 = shalt.err (!%p645_p2)
}
  0x2e   : > { %526 = dma.hbm_to_vmem [thread:$0]  (!%p817_p9), %s159_s23, 32, %s162_s25, %s148_s26  }
  0x2f   : > { %170 = sbr.rel (%p835_p6) target bundleno = 396 (0x18c), region = 28  ;;  %s172_s22 = sand.u32 (!%p835_p6), 1, %s715_s10  }
  0x30   : > { %s496_s4 = sshll.u32 (!%p835_p6), %s172_s22, 3  ;;  %s173_s5 = scalar_lea.sflag (!%p835_p6), [#allocation4], %s172_s22 }
  0x31   : > { %s176_s6 = scalar_lea.vmem (!%p835_p6), [#allocation3], %s496_s4 }
  0x34   : > { %698 = dma.done.wait (%p799_p7), %s173_s5, 128  }
  0x35   : > { %700 = vsyncadd (%p799_p7), %s173_s5, 4294967168  ;;  %s497_s7 = sshll.u32 %s172_s22, 1  ;;  %s182_s9 = scalar_lea.sflag [#allocation7], %s172_s22 }
  0x36   : > { %s857_s17 = scalar_lea.vmem [#allocation6], %s497_s7 }
  0x37   : > { %702 = dma.done.wait (%p799_p7), %s182_s9, 32  }
  0x38   : > { %704 = vsyncadd (%p799_p7), %s182_s9, 4294967264  ;;  %p208_p9 = scmp.eq.s32.totalorder %s723_s12, 0 }
  0x39   : > { %v214_v0 = vlaneseq (%p208_p9)  ;;  %v735_v1 = vmov (%p208_p9), 0.0  }
  0x3a   : > { %213 = sbr.rel (!%p208_p9) target bundleno = 63 (0x3f), region = 40 }
  0x3b   : > { %vm216_vm0 = vcmp.lt.s32.totalorder (%p208_p9), %v214_v0, 256 }
  0x3c   : > { %218 = vst.msk [vmem:[#allocation2] sm:$0x3] (%p208_p9), %vm216_vm0, %v735_v1 }
  0x3f PF: > { %v219_v2 = vld [vmem:[%s176_s6] sm:$0xff]  ;;  %vm224_vm1 = vcmask 1043456   ;;  %p355_p12 = scmp.eq.s32.totalorder %s723_s12, 1  ;;  %v267_v11 = vlaneseq  ;;  %v220_v22 = vld [vmem:[%s857_s17] sm:$0x3]  ;;  %v736_v28 = vmov 0.0  }
  0x40   : > { %v222_v3 = vcombine.high %v219_v2, %v219_v2  ;;  %v225_v4 = vsel %vm224_vm1, %v219_v2, -inf  ;;  %vm372_vm5 = vcmask (%p355_p12), 1040384   ;;  %vm389_vm6 = vcmask (%p355_p12), 0  }
  0x41   : > { %v226_v5 = vrot.slane %v225_v4, 4  ;;  %v868_v16 = vshrl.u32 %v267_v11, 7  ;;  %vm352_vm4 = vcmp.lt.s32.totalorder %v267_v11, 256 }
  0x42   : > { %v232_v6 = vsel %vm224_vm1, %v222_v3, -inf }
  0x43   : > { %v227_v7 = vmax.f32 %v225_v4, %v226_v5  ;;  %v233_v8 = vrot.slane %v232_v6, 4  ;;  %v271_v20 = vsub.s32 0, %v868_v16  ;;  %v275_v21 = vsub.s32 1, %v868_v16 }
  0x45   : > { %v228_v9 = vrot.slane %v227_v7, 2  ;;  %v234_v10 = vmax.f32 %v232_v6, %v233_v8  ;;  %v272_v25 = vrot.slane %v220_v22, %v271_v20  ;;  %v276_v26 = vrot.slane %v220_v22, %v275_v21 }
  0x47   : > { %v229_v12 = vmax.f32 %v227_v7, %v228_v9  ;;  %v235_v13 = vrot.slane %v234_v10, 2  ;;  %vm277_vm2 = vcmp.eq.s32.totalorder %v868_v16, %v272_v25  ;;  %vm278_vm3 = vcmp.eq.s32.totalorder %v868_v16, %v276_v26 }
  0x48   : > { %v499_v29 = vsel %vm277_vm2, 1.0, %v736_v28  ;;  %v500_v30 = vsel %vm278_vm3, 1.0, %v736_v28  ;;  %v330_v28 = vld [vmem:[#allocation2] sm:$0x3] }
  0x49   : > { %v230_v14 = vrot.slane %v229_v12, 1  ;;  %v236_v15 = vmax.f32 %v234_v10, %v235_v13  ;;  %v285_v31 = vcombine.low %v499_v29, %v500_v30  ;;  %v737_v10 = vmov 1966171168  }
  0x4b   : > { %v231_v17 = vmax.f32 %v229_v12, %v230_v14  ;;  %v237_v18 = vrot.slane %v236_v15, 1  ;;  %v335_v12 = vunpack.c.l.s4 %v737_v10 }
  0x4d   : > { %v238_v19 = vmax.f32 %v236_v15, %v237_v18 }
  0x4f   : > { %v241_v23 = vcombine.low %v231_v17, %v238_v19  ;;  %v336_v19 = vunpack.c.0.s8 %v335_v12 }
  0x51   : > { %v243_v24 = vsub.f32 %v219_v2, %v241_v23  ;;  %v339_v25 = vsub.s32 %v336_v19, %v868_v16 }
  0x53   : > { %v244_v27 = vmul.f32 1.442695, %v243_v24  ;;  %v287_v32 = vmul.f32 %v285_v31, %v243_v24 }
  0x55   : > { %583 = vpow2.f32 %v244_v27  ;;  %v289_v36 = vcombine.high %v287_v32, %v287_v32  ;;  %v291_v39 = vsel %vm224_vm1, %v287_v32, 0.0 }
  0x56   : > { %v292_v45 = vrot.slane %v291_v39, 4 }
  0x57   : > { %v298_v42 = vsel %vm224_vm1, %v289_v36, 0.0 }
  0x58   : > { %v299_v48 = vrot.slane %v298_v42, 4  ;;  %v293_v51 = vadd.f32 %v292_v45, %v291_v39 }
  0x5a   : > { %v300_v54 = vadd.f32 %v299_v48, %v298_v42  ;;  %v294_v56 = vrot.slane %v293_v51, 2 }
  0x5c   : > { %v301_v57 = vrot.slane %v300_v54, 2  ;;  %v295_v58 = vadd.f32 %v294_v56, %v293_v51 }
  0x5e   : > { %v302_v59 = vadd.f32 %v301_v57, %v300_v54  ;;  %v296_v60 = vrot.slane %v295_v58, 1 }
  0x60   : > { %v303_v61 = vrot.slane %v302_v59, 1  ;;  %v297_v62 = vadd.f32 %v296_v60, %v295_v58 }
  0x62   : > { %v584_v33 = vpop.eup %583  ;;  %v304_v1 = vadd.f32 %v303_v61, %v302_v59 }
  0x63   : > { %v247_v34 = vcombine.high %v584_v33, %v584_v33  ;;  %v249_v35 = vsel %vm224_vm1, %v584_v33, 0.0 }
  0x64   : > { %v250_v37 = vrot.slane %v249_v35, 4 }
  0x65   : > { %v256_v38 = vsel %vm224_vm1, %v247_v34, 0.0 }
  0x66   : > { %v251_v40 = vadd.f32 %v250_v37, %v249_v35  ;;  %v257_v41 = vrot.slane %v256_v38, 4 }
  0x68   : > { %v252_v43 = vrot.slane %v251_v40, 2  ;;  %v258_v44 = vadd.f32 %v257_v41, %v256_v38 }
  0x6a   : > { %v253_v46 = vadd.f32 %v252_v43, %v251_v40  ;;  %v259_v47 = vrot.slane %v258_v44, 2 }
  0x6c   : > { %v254_v49 = vrot.slane %v253_v46, 1  ;;  %v260_v50 = vadd.f32 %v259_v47, %v258_v44 }
  0x6e   : > { %v255_v52 = vadd.f32 %v254_v49, %v253_v46  ;;  %v261_v53 = vrot.slane %v260_v50, 1 }
  0x70   : > { %v262_v55 = vadd.f32 %v261_v53, %v260_v50  ;;  %585 = vlog2.f32 %v255_v52 }
  0x72   : > { %587 = vlog2.f32 %v262_v55 }
  0x7d   : > { %v586_v63 = vpop.eup %585 }
  0x7e   : > { %v264_v0 = vmul.f32 0.6931472, %v586_v63 }
  0x7f   : > { %v588_v2 = vpop.eup %587 }
  0x80   : > { %v266_v3 = vmul.f32 0.6931472, %v588_v2  ;;  %v305_v4 = vsub.f32 %v297_v62, %v264_v0 }
  0x82   : > { %v306_v5 = vsub.f32 %v304_v1, %v266_v3  ;;  %v307_v6 = vmul.f32 1.442695, %v305_v4 }
  0x84   : > { %589 = vpow2.f32 %v307_v6  ;;  %v309_v7 = vmul.f32 1.442695, %v306_v5 }
  0x86   : > { %591 = vpow2.f32 %v309_v7 }
  0x91   : > { %v590_v8 = vpop.eup %589 }
  0x92   : > { %v311_v9 = vsub.f32 1.0, %v590_v8 }
  0x93   : > { %v592_v13 = vpop.eup %591 }
  0x94   : > { %v312_v14 = vsub.f32 1.0, %v592_v13  ;;  %v313_v15 = vmul.f32 %v311_v9, %v311_v9 }
  0x96   : > { %v314_v17 = vmul.f32 %v312_v14, %v312_v14  ;;  %v315_v18 = vsub.f32 0.0, %v313_v15 }
  0x98   : > { %v316_v22 = vsub.f32 0.0, %v314_v17  ;;  %v317_v23 = vmul.f32 %v315_v18, %v305_v4 }
  0x9a   : > { %v318_v24 = vmul.f32 %v316_v22, %v306_v5 }
  0x9c   : > { %v333_v26 = vcombine.low %v317_v23, %v318_v24 }
  0x9e   : > { %v340_v27 = vrot.slane %v333_v26, %v339_v25 }
  0xa0   : > { %v347_v29 = vrot.slane %v340_v27, %v339_v25  ;;  %359 = sbr.rel (!%p355_p12) target bundleno = 381 (0x17d), region = 44 }
  0xa2   : > { %v349_v30 = vadd.f32 %v347_v29, %v330_v28 }
  0xa4   : > { %354 = vst.msk [vmem:[#allocation2] sm:$0x3] %vm352_vm4, %v349_v30 }
  0xab   : > { %v360_v31 = vld [vmem:[#allocation2] sm:$0x3] }
  0xac   : > { %v365_v32 = vrot.slane %v360_v31, %v271_v20  ;;  %v369_v33 = vrot.slane %v360_v31, %v275_v21 }
  0xae   : > { %v373_v34 = vsel %vm372_vm5, %v365_v32, 0.0  ;;  %v374_v35 = vsel %vm372_vm5, %v369_v33, 0.0 }
  0xaf   : > { %v375_v36 = vadd.f32 %v374_v35, %v373_v34 }
  0xb1   : > { %376 = vadd.xlane.f32.xlu0 %v375_v36 }
 0x13a   : > { %v377_v37 = vpop.xlane.xlu0 %376 }
 0x13b   : > { %v378_v38 = vrot.slane %v377_v37, 4 }
 0x13d   : > { %v379_v11 = vadd.f32 %v378_v38, %v377_v37 }
 0x13f   : > { %v380_v39 = vrot.slane %v379_v11, 2 }
 0x141   : > { %v381_v40 = vadd.f32 %v380_v39, %v379_v11 }
 0x143   : > { %v382_v41 = vrot.slane %v381_v40, 1 }
 0x145   : > { %v383_v42 = vadd.f32 %v382_v41, %v381_v40 }
 0x147   : > { %510 = vpush %v383_v42 }
 0x178   : > { %s511_s12 = spop %510 }
 0x179   : > { %s387_s20 = smul.f32 0.001953125, %s511_s12 }
 0x17b   : > { %v388_v43 = vstv %s387_s20 }
 0x17c   : > { %390 = vst.msk [vmem:[#allocation8] sm:$0x1] %vm389_vm6, %v388_v43 }
 0x17d PF: > { %p893_p7 = scmp.eq.s32.totalorder %s486_s15, 1  ;;  %s738_s8 = smov [#allocation8]  }
 0x17e   : > { %s398_s18 = sshll.u32 %s738_s8, 4  ;;  %s399_s18 = int_to_ptr.vmem [resolvable:$true] %s398_s18 }
 0x17f   : > { %s649_s19 = scalar_lea.vmem %s399_s18, 16  ;;  %s655_s23 = scalar_lea.vmem %s399_s18, 32 }
 0x180   : > { %p650_p3 = scmp.ne.s32.totalorder %s399_s18, %s649_s19  ;;  %p656_p6 = scmp.lt.s32.totalorder %s399_s18, %s399_s18 }
 0x181   : > { %p657_p8 = scmp.lt.s32.totalorder %s655_s23, %s649_s19 }
 0x182   : > { %p651_p4 = pnand %p650_p3, %p893_p7 }
 0x183   : > { %p658_p13 = por %p657_p8, %p656_p6 }
 0x184   : > { %p652_p5 = pneg %p651_p4 }
 0x186   : > { %p659_p0 = pnand %p658_p13, %p652_p5 }
 0x188   : > { %662 = shalt.err (!%p659_p0)
}
 0x189   : > { %517 = dma.vmem_to_hbm [thread:$0]  (%p893_p7), %s399_s18, 16, %s928_s2, [#allocation5]  }
 0x18a   : > { %706 = dma.done.wait (%p893_p7), [#allocation5], 16  }
 0x18b   : > { %708 = vsyncadd (%p893_p7), [#allocation5], 4294967280 }
 0x18c PF: > { %s19_s14 = sadd.s32 1, %s731_s14   ;;  %s934_s9 = smov %s715_s10 }
 0x18d   : > { %p16_p10 = scmp.ge.s32.totalorder %s19_s14, 4   ;;  %s935_s10 = smov %s719_s11 }
 0x18e   : > { %s936_s11 = smov %s805_s21  ;;  %s937_s12 = smov %s727_s13 }
 0x18f   : > { %s938_s13 = smov %s940_s16  ;;  %18 = sbr.rel (!%p16_p10) target bundleno = 7 (0x7), region = 86 }
 0x194   :  { %411 = vsyncpa [#allocation4], 1 }
 0x195   :  { %413 = vsyncpa [#allocation4 + $0x1], 1 }
 0x196   :  { %414 = vsyncpa [#allocation7], 1 }
 0x197   :  { %416 = vsyncpa [#allocation7 + $0x1], 1 }
 0x198   :  { %417 = vsyncpa [#allocation5], 1 }
 0x199   :  { %419 = vsyncpa [#allocation5 + $0x1], 1 }

</bundles_post_ra>
